<compile_context>
chip_gen: v7x
topology: tpu7x:2x2x1
jax: 0.10.0
libtpu: 0.0.40
codegen_flags: <defaults>
</compile_context>

<pallas_src>
import functools

import numpy as np
import jax
import jax.numpy as jnp
from jax import lax
from jax.experimental import pallas as pl
from jax.experimental.pallas import tpu as pltpu

LANE = 128
SUBLANE = 8


def _pad_kernel(len_ref, tok_ref, out_ref, *, pad_value):
    """One grid step = TILE_B rows: masked copy, padding the tail of each row."""
    pos = lax.broadcasted_iota(jnp.int32, out_ref.shape, 1)      # (TILE_B, l_pad)
    out_ref[...] = jnp.where(pos < len_ref[...], tok_ref[...], jnp.int32(pad_value))


def _round_up(x, m):
    return ((x + m - 1) // m) * m


def _choose_tile_b(B, l_pad):
    """Rows per grid step: multiple of 8, capped so ~4 live (in+out, double-buffered)
    int32 tiles stay under ~16 MiB (safe on v5e/v6e/v7x scoped-VMEM defaults)."""
    b8 = _round_up(max(B, 1), SUBLANE)
    vmem_budget = 16 * 1024 * 1024
    cap = max(SUBLANE, (vmem_budget // (4 * 4 * l_pad)) // SUBLANE * SUBLANE)
    return max(SUBLANE, min(b8, 256, cap))


def to_tensor_pallas(sequences, padding_value=None, dtype=jnp.int32):
    """Equivalent of torchtext's to_tensor(input, padding_value, dtype)."""
    # 1-D List[int] case: plain conversion, no padding semantics involved (glue).
    if len(sequences) > 0 and not isinstance(sequences[0], (list, tuple)):
        return jnp.asarray(np.asarray(sequences, dtype=np.int64).astype(np.int32), dtype=dtype)

    B = len(sequences)
    if B == 0:
        return jnp.zeros((0, 0), dtype=dtype)

    lens = [len(s) for s in sequences]
    max_len = max(lens)
    if padding_value is None and any(l != max_len for l in lens):
        raise ValueError("ragged input requires padding_value (matches torch error behavior)")
    # NOTE: float padding_value with a float dtype would be truncated here (int ids assumed).
    pad_value = 0 if padding_value is None else int(padding_value)

    l_pad = max(LANE, _round_up(max_len, LANE))
    TILE_B = _choose_tile_b(B, l_pad)
    B_pad = _round_up(B, TILE_B)

    # Host-side glue (numpy, single device transfer): dense (B_pad, l_pad) layout.
    tok_np = np.zeros((B_pad, l_pad), dtype=np.int32)
    len_np = np.zeros((B_pad, 1), dtype=np.int32)
    for i, s in enumerate(sequences):
        n = lens[i]
        if n:
            tok_np[i, :n] = np.asarray(s, dtype=np.int32)
        len_np[i, 0] = n

    tok = jnp.asarray(tok_np)
    len_arr = jnp.asarray(len_np)

    kernel = functools.partial(_pad_kernel, pad_value=pad_value)
    out = pl.pallas_call(
        kernel,
        out_shape=jax.ShapeDtypeStruct((B_pad, l_pad), jnp.int32),
        grid=(B_pad // TILE_B,),
        in_specs=[
            pl.BlockSpec((TILE_B, 1), lambda i: (i, 0)),       # lengths
            pl.BlockSpec((TILE_B, l_pad), lambda i: (i, 0)),   # tokens
        ],
        out_specs=pl.BlockSpec((TILE_B, l_pad), lambda i: (i, 0)),
        compiler_params=pltpu.CompilerParams(dimension_semantics=("parallel",)),
    )(len_arr, tok)

    return out[:B, :max_len].astype(dtype)


class ToTensor:
    """JAX/Pallas mirror of the PyTorch ToTensor module."""

    def __init__(self, padding_value=None, dtype=jnp.int32):
        self.padding_value = padding_value
        self.dtype = dtype

    def __call__(self, input):
        return to_tensor_pallas(input, padding_value=self.padding_value, dtype=self.dtype)


if __name__ == "__main__":
    key = jax.random.PRNGKey(0)
    lens = [5, 11, 3, 8]                                   # ragged batch of 4 sequences
    toks = jax.random.randint(key, (sum(lens),), 0, 1000, dtype=jnp.int32)
    toks_list = [int(t) for t in toks]
    seqs, c = [], 0
    for l in lens:
        seqs.append(toks_list[c:c + l])
        c += l

    pad_val = 7
    module = ToTensor(padding_value=pad_val, dtype=jnp.int32)
    out = module(seqs)
    out = jax.block_until_ready(out)

    # Reference check (pure Python/JAX padding).
    max_len = max(lens)
    ref = jnp.stack(
        [jnp.asarray(s + [pad_val] * (max_len - len(s)), dtype=jnp.int32) for s in seqs]
    )
    assert out.shape == (len(lens), max_len), out.shape
    assert out.dtype == jnp.int32
    assert bool(jnp.all(out == ref))

    # Also exercise the 1-D List[int] path.
    flat_out = module(toks_list[:6])
    flat_out = jax.block_until_ready(flat_out)
    assert flat_out.shape == (6,)
    assert bool(jnp.all(flat_out == jnp.asarray(toks_list[:6], dtype=jnp.int32)))

    # Empty batch edge case.
    empty_out = module([])
    assert empty_out.shape == (0, 0)

    print("KERNEL_OK")
</pallas_src>

<mosaic_0001>
module attributes {stable_mosaic.version = 11 : i64} {
  func.func @_pad_kernel(%arg0: i32, %arg1: memref<8x1xi32, #tpu.memory_space<vmem>>, %arg2: memref<8x128xi32, #tpu.memory_space<vmem>>, %arg3: memref<8x128xi32, #tpu.memory_space<vmem>>) attributes {dimension_semantics = [#tpu.dimension_semantics<parallel>], iteration_bounds = array<i64: 1>, scalar_prefetch = 0 : i64, scratch_operands = 0 : i64, tpu.core_type = #tpu.core_type<tc>, window_params = [{transform_indices = @transform_0, window_bounds = array<i64: 8, 1>}, {transform_indices = @transform_1, window_bounds = array<i64: 8, 128>}, {transform_indices = @transform_2, window_bounds = array<i64: 8, 128>}]} {
    %0 = tpu.iota {dimensions = array<i32: 1>} : vector<8x128xi32>
    %c0 = arith.constant 0 : index
    %c0_0 = arith.constant 0 : index
    %1 = vector.load %arg1[%c0, %c0_0] : memref<8x1xi32, #tpu.memory_space<vmem>>, vector<8x1xi32>
    %2 = vector.broadcast %1 : vector<8x1xi32> to vector<8x128xi32>
    %3 = arith.cmpi slt, %0, %2 : vector<8x128xi32>
    %c0_1 = arith.constant 0 : index
    %c0_2 = arith.constant 0 : index
    %4 = vector.load %arg2[%c0_1, %c0_2] : memref<8x128xi32, #tpu.memory_space<vmem>>, vector<8x128xi32>
    %c7_i32 = arith.constant 7 : i32
    %5 = vector.broadcast %c7_i32 : i32 to vector<8x128xi32>
    %6 = arith.select %3, %4, %5 : vector<8x128xi1>, vector<8x128xi32>
    %c0_3 = arith.constant 0 : index
    %c0_4 = arith.constant 0 : index
    %7 = vector.load %arg3[%c0_3, %c0_4] : memref<8x128xi32, #tpu.memory_space<vmem>>, vector<8x128xi32>
    tpu.vector_store %arg3[%c0_3, %c0_4], %6 {strides = array<i32>} : memref<8x128xi32, #tpu.memory_space<vmem>>, vector<8x128xi32>,
    return
  }
  func.func @transform_0(%arg0: i32) -> (i32, i32) {
    %c0_i32 = arith.constant 0 : i32
    %c0_i32_0 = arith.constant 0 : i32
    return %arg0, %c0_i32 : i32, i32
  }
  func.func @transform_1(%arg0: i32) -> (i32, i32) {
    %c0_i32 = arith.constant 0 : i32
    %c0_i32_0 = arith.constant 0 : i32
    return %arg0, %c0_i32 : i32, i32
  }
  func.func @transform_2(%arg0: i32) -> (i32, i32) {
    %c0_i32 = arith.constant 0 : i32
    %c0_i32_0 = arith.constant 0 : i32
    return %arg0, %c0_i32 : i32, i32
  }
}

</mosaic_0001>

<bundles_post_ra>
// kernel: tpu_custom_call.1
= control target key start
LH: loop header
LB: loop body
LE: loop exit
PB: predicated region body
PF: predicated region fallthrough
CT: control target
= control target key end

     0   :  { %s98_s0 = inlined_call_operand.vmem [shape: s32[8,1], index: 0, kind: input, shape index: {}]   ;;  %s99_s1 = inlined_call_operand.vmem [shape: s32[8,128], index: 1, kind: input, shape index: {}]   ;;  %s100_s2 = inlined_call_operand.hbm [shape: s32[8,128], index: 2, kind: output, shape index: {}]  }
   0x1   :  { %v14_v0 = vld [vmem:[%s98_s0] sm:$0xff] }
   0x2   :  { %7 = vsyncpa [#allocation3], 0  ;;  %v63_v1 = vmov 0   ;;  %v12_v2 = vlaneseq  ;;  %s64_s11 = smov [#allocation2]   ;;  %v19_v4 = vld [vmem:[%s99_s1] sm:$0xff] }
   0x3   :  { %38 = vset.pattern.permute.xlu0 %v63_v1  ;;  %s28_s12 = sshll.u32 %s64_s11, 4  ;;  %s29_s12 = int_to_ptr.vmem [resolvable:$true] %s28_s12 }
   0x4   :  { %16 = vperm.xlu0 %38, %v14_v0   ;;  %v13_v3 = vand.u32 127, %v12_v2  ;;  %s39_s15 = scalar_lea.vmem %s29_s12, 128  ;;  %p44_p1 = scmp.lt.s32.totalorder %s29_s12, %s29_s12 }
   0x5   :  { %p40_p0 = scmp.ne.s32.totalorder %s29_s12, %s39_s15  ;;  %p45_p2 = scmp.lt.s32.totalorder %s39_s15, %s39_s15 }
   0x7   :  { %p46_p3 = por %p45_p2, %p44_p1 }
   0x9   :  { %p47_p4 = pnand %p46_p3, %p40_p0 }
  0x83   :  { %v17_v5 = vpop.permute.xlu0 %16 }
  0x84   :  { %vm18_vm0 = vcmp.lt.s32.totalorder %v13_v3, %v17_v5 }
  0x85   :  { %v20_v6 = vsel %vm18_vm0, %v19_v4, 7 }
  0x86   :  { %21 = vst [vmem:[#allocation2] sm:$0xff] %v20_v6 }
  0x87   :  { %50 = shalt.err (!%p47_p4)
}
  0x88   :  { %s51_s17 = scalar_lea.hbm %s100_s2, 128 }
  0x89   :  { %p52_p5 = scmp.ne.s32.totalorder %s100_s2, %s51_s17  ;;  %p55_p6 = scmp.lt.u32.totalorder %s51_s17, %s100_s2 }
  0x8b   :  { %p57_p7 = pnand %p55_p6, %p52_p5 }
  0x8d   :  { %60 = shalt.err (!%p57_p7)
}
  0x8e   :  { %31 = dma.vmem_to_hbm [thread:$0]  %s29_s12, 128, %s100_s2, [#allocation3]  }
  0x8f   :  { %61 = dma.done.wait [#allocation3], 128  }
  0x90   :  { %62 = vsyncadd [#allocation3], 4294967168 }
  0x91   :  { %35 = vsyncpa [#allocation3], 1 }

</bundles_post_ra>
